<compile_context>
chip_gen: v5e
topology: v5e:2x2
jax: 0.10.0
libtpu: 0.0.40
codegen_flags: <defaults>
</compile_context>

<pallas_src>
import math

import jax
import jax.numpy as jnp
from jax.experimental import pallas as pl
from jax.experimental.pallas import tpu as pltpu


def _round_up(n, m):
    return ((n + m - 1) // m) * m


def _make_fused_lstm_kernel(num_layers, din0_pad, hidden):
    """Build a kernel that runs all `num_layers` LSTM cells for one timestep.

    Kernel refs (in order):
      x_ref   : (B_pad, din0_pad)      layer-0 input, feature-dim zero padded
      h_ref   : (L, B_pad, H)          previous hidden states
      c_ref   : (L, B_pad, H)          previous cell states
      w_ref_l : (din_pad_l + H, 4H)    per layer, [W_ih^T ; W_hh^T] concatenated
      b_ref_l : (1, 4H)                per layer, b_ih + b_hh
      out_ref : (B_pad, 2*L*H)         packed [h_0 .. h_{L-1}, c_0 .. c_{L-1}]
    """

    def kernel(x_ref, h_ref, c_ref, *rest):
        w_refs = rest[:num_layers]
        b_refs = rest[num_layers:2 * num_layers]
        out_ref = rest[2 * num_layers]

        layer_in = x_ref[...]
        din = din0_pad
        for l in range(num_layers):            # unrolled: L is small and static
            w_ref = w_refs[l]
            h = h_ref[l]
            c = c_ref[l]
            # Pre-activation gates on the MXU: one weight buffer per layer,
            # two dots on sublane-aligned (multiple-of-8) static slices of it.
            gates = (
                jnp.dot(layer_in, w_ref[0:din, :],
                        preferred_element_type=jnp.float32)
                + jnp.dot(h, w_ref[din:din + hidden, :],
                          preferred_element_type=jnp.float32)
                + b_refs[l][...]
            )
            # PyTorch gate order: i, f, g, o.
            # NOTE: at H=32 these gate slices are not 128-lane aligned (minor
            # XLU cost here; pad H to a multiple of 128 at production widths).
            i = jax.nn.sigmoid(gates[:, 0 * hidden:1 * hidden])
            f = jax.nn.sigmoid(gates[:, 1 * hidden:2 * hidden])
            g = jnp.tanh(gates[:, 2 * hidden:3 * hidden])
            o = jax.nn.sigmoid(gates[:, 3 * hidden:4 * hidden])
            c_new = f * c + i * g
            h_new = o * jnp.tanh(c_new)
            # Packed, lane-dense output slab -> one dense HBM writeback.
            out_ref[:, l * hidden:(l + 1) * hidden] = h_new.astype(out_ref.dtype)
            out_ref[:, (num_layers + l) * hidden:
                       (num_layers + l + 1) * hidden] = c_new.astype(out_ref.dtype)
            # Inter-layer activation stays on-chip; never written back to HBM.
            layer_in = h_new
            din = hidden

    return kernel


def init_params(key, num_inputs, num_outputs, num_layers):
    """Deterministic re-implementation of LSTMController.__init__/reset_parameters."""
    stdev = 5.0 / math.sqrt(num_inputs + num_outputs)
    hidden = num_outputs
    din0_pad = _round_up(num_inputs, 8)
    layer_params = []
    for layer in range(num_layers):
        din = num_inputs if layer == 0 else hidden
        din_pad = din0_pad if layer == 0 else hidden
        key, k_ih, k_hh = jax.random.split(key, 3)
        w_ih = jax.random.uniform(k_ih, (4 * hidden, din),
                                  minval=-stdev, maxval=stdev, dtype=jnp.float32)
        w_hh = jax.random.uniform(k_hh, (4 * hidden, hidden),
                                  minval=-stdev, maxval=stdev, dtype=jnp.float32)
        b_ih = jnp.zeros((4 * hidden,), jnp.float32)   # nn.init.constant_(p, 0)
        b_hh = jnp.zeros((4 * hidden,), jnp.float32)

        wih_t = w_ih.T                                  # (din, 4H)
        whh_t = w_hh.T                                  # (H, 4H)
        # Zero-pad the input-weight rows to a sublane multiple and fuse with
        # the recurrent weight: a single (din_pad + H, 4H) buffer per layer.
        wih_t_pad = jnp.zeros((din_pad, 4 * hidden), jnp.float32).at[:din].set(wih_t)
        w_cat = jnp.concatenate([wih_t_pad, whh_t], axis=0)

        layer_params.append(dict(
            w=w_cat,                                    # kernel weight (fused)
            b=(b_ih + b_hh).reshape(1, -1),             # (1, 4H)
            wih_t=wih_t, whh_t=whh_t,                   # for the pure-JAX reference
        ))
    key, k_h, k_c = jax.random.split(key, 3)
    lstm_h_bias = jax.random.normal(k_h, (num_layers, 1, hidden), jnp.float32) * 0.05
    lstm_c_bias = jax.random.normal(k_c, (num_layers, 1, hidden), jnp.float32) * 0.05
    return layer_params, lstm_h_bias, lstm_c_bias


def create_new_state(lstm_h_bias, lstm_c_bias, batch_size):
    h0 = jnp.tile(lstm_h_bias, (1, batch_size, 1))
    c0 = jnp.tile(lstm_c_bias, (1, batch_size, 1))
    return h0, c0


def lstm_controller_forward(x, prev_state, layer_params):
    """Equivalent of LSTMController.forward: single-timestep, multi-layer LSTM."""
    h_prev, c_prev = prev_state                  # (L, B, H) each
    num_layers, batch, hidden = h_prev.shape
    num_inputs = x.shape[-1]
    dtype = x.dtype

    din0_pad = _round_up(num_inputs, 8)
    b_pad = _round_up(batch, 8)                  # pad batch to full f32 sublanes

    x_pad = jnp.zeros((b_pad, din0_pad), dtype).at[:batch, :num_inputs].set(x)
    h_pad = jnp.zeros((num_layers, b_pad, hidden), dtype).at[:, :batch, :].set(h_prev)
    c_pad = jnp.zeros((num_layers, b_pad, hidden), dtype).at[:, :batch, :].set(c_prev)

    kernel = _make_fused_lstm_kernel(num_layers, din0_pad, hidden)
    num_in = 3 + 2 * num_layers
    vmem_spec = pl.BlockSpec(memory_space=pltpu.MemorySpace.VMEM)

    slab = pl.pallas_call(
        kernel,
        out_shape=jax.ShapeDtypeStruct((b_pad, 2 * num_layers * hidden), dtype),
        in_specs=[vmem_spec] * num_in,
        out_specs=vmem_spec,
    )(x_pad, h_pad, c_pad,
      *[p["w"] for p in layer_params],
      *[p["b"] for p in layer_params])

    # Unpack the lane-dense slab back to the module's (L, B, H) state layout.
    h_slab = slab[:batch, :num_layers * hidden]
    c_slab = slab[:batch, num_layers * hidden:]
    h_out = h_slab.reshape(batch, num_layers, hidden).transpose(1, 0, 2)
    c_out = c_slab.reshape(batch, num_layers, hidden).transpose(1, 0, 2)
    outp = h_out[num_layers - 1]                 # == outp.squeeze(0) of nn.LSTM
    return outp, (h_out, c_out)


def _reference_forward(x, prev_state, layer_params):
    """Pure-JAX reference of the same math (for a correctness sanity check)."""
    h_prev, c_prev = prev_state
    num_layers = h_prev.shape[0]
    hidden = h_prev.shape[-1]
    layer_in = x
    h_list, c_list = [], []
    for layer in range(num_layers):
        p = layer_params[layer]
        gates = layer_in @ p["wih_t"] + h_prev[layer] @ p["whh_t"] + p["b"]
        i = jax.nn.sigmoid(gates[:, 0 * hidden:1 * hidden])
        f = jax.nn.sigmoid(gates[:, 1 * hidden:2 * hidden])
        g = jnp.tanh(gates[:, 2 * hidden:3 * hidden])
        o = jax.nn.sigmoid(gates[:, 3 * hidden:4 * hidden])
        c_new = f * c_prev[layer] + i * g
        h_new = o * jnp.tanh(c_new)
        h_list.append(h_new)
        c_list.append(c_new)
        layer_in = h_new
    return layer_in, (jnp.stack(h_list), jnp.stack(c_list))


if __name__ == "__main__":
    num_inputs, num_outputs, num_layers = 16, 32, 2
    batch = 4

    key = jax.random.PRNGKey(0)
    key, k_params, k_x = jax.random.split(key, 3)

    layer_params, lstm_h_bias, lstm_c_bias = init_params(
        k_params, num_inputs, num_outputs, num_layers)
    prev_state = create_new_state(lstm_h_bias, lstm_c_bias, batch)

    x = jax.random.normal(k_x, (batch, num_inputs), jnp.float32)

    outp, (h_new, c_new) = lstm_controller_forward(x, prev_state, layer_params)
    outp = jax.block_until_ready(outp)
    h_new = jax.block_until_ready(h_new)
    c_new = jax.block_until_ready(c_new)

    # Sanity check against a pure-JAX reference of the same math.
    ref_outp, (ref_h, ref_c) = _reference_forward(x, prev_state, layer_params)
    assert outp.shape == (batch, num_outputs)
    assert h_new.shape == (num_layers, batch, num_outputs)
    assert c_new.shape == (num_layers, batch, num_outputs)
    assert jnp.allclose(outp, ref_outp, atol=1e-5)
    assert jnp.allclose(h_new, ref_h, atol=1e-5)
    assert jnp.allclose(c_new, ref_c, atol=1e-5)

    print("KERNEL_OK")
</pallas_src>

<mosaic_0001>
module attributes {stable_mosaic.version = 11 : i64} {
  func.func @kernel(%arg0: memref<8x16xf32, #tpu.memory_space<vmem>>, %arg1: memref<2x8x32xf32, #tpu.memory_space<vmem>>, %arg2: memref<2x8x32xf32, #tpu.memory_space<vmem>>, %arg3: memref<48x128xf32, #tpu.memory_space<vmem>>, %arg4: memref<64x128xf32, #tpu.memory_space<vmem>>, %arg5: memref<1x128xf32, #tpu.memory_space<vmem>>, %arg6: memref<1x128xf32, #tpu.memory_space<vmem>>, %arg7: memref<8x128xf32, #tpu.memory_space<vmem>>) attributes {dimension_semantics = [], scalar_prefetch = 0 : i64, scratch_operands = 0 : i64, tpu.core_type = #tpu.core_type<tc>} {
    %c0 = arith.constant 0 : index
    %c0_0 = arith.constant 0 : index
    %0 = vector.load %arg0[%c0, %c0_0] : memref<8x16xf32, #tpu.memory_space<vmem>>, vector<8x16xf32>
    %c0_1 = arith.constant 0 : index
    %c0_2 = arith.constant 0 : index
    %c0_3 = arith.constant 0 : index
    %1 = vector.load %arg1[%c0_1, %c0_2, %c0_3] : memref<2x8x32xf32, #tpu.memory_space<vmem>>, vector<1x8x32xf32>
    %2 = vector.shape_cast %1 : vector<1x8x32xf32> to vector<8x32xf32>
    %c0_4 = arith.constant 0 : index
    %c0_5 = arith.constant 0 : index
    %c0_6 = arith.constant 0 : index
    %3 = vector.load %arg2[%c0_4, %c0_5, %c0_6] : memref<2x8x32xf32, #tpu.memory_space<vmem>>, vector<1x8x32xf32>
    %4 = vector.shape_cast %3 : vector<1x8x32xf32> to vector<8x32xf32>
    %c0_7 = arith.constant 0 : index
    %c0_8 = arith.constant 0 : index
    %5 = vector.load %arg3[%c0_7, %c0_8] : memref<48x128xf32, #tpu.memory_space<vmem>>, vector<16x128xf32>
    %cst = arith.constant dense<0.000000e+00> : vector<8x128xf32>
    %6 = tpu.matmul %0, %5, %cst {dimension_numbers = #tpu.dot_dimension_numbers<[1], [0], [0], [1], [0, 0, 1, 1], [], []>} : vector<8x16xf32>, vector<16x128xf32>, vector<8x128xf32> -> vector<8x128xf32>
    %c16 = arith.constant 16 : index
    %c0_9 = arith.constant 0 : index
    %7 = vector.load %arg3[%c16, %c0_9] : memref<48x128xf32, #tpu.memory_space<vmem>>, vector<32x128xf32>
    %cst_10 = arith.constant dense<0.000000e+00> : vector<8x128xf32>
    %8 = tpu.matmul %2, %7, %cst_10 {dimension_numbers = #tpu.dot_dimension_numbers<[1], [0], [0], [1], [0, 0, 1, 1], [], []>} : vector<8x32xf32>, vector<32x128xf32>, vector<8x128xf32> -> vector<8x128xf32>
    %9 = arith.addf %6, %8 : vector<8x128xf32>
    %c0_11 = arith.constant 0 : index
    %c0_12 = arith.constant 0 : index
    %10 = vector.load %arg5[%c0_11, %c0_12] : memref<1x128xf32, #tpu.memory_space<vmem>>, vector<1x128xf32>
    %11 = vector.broadcast %10 : vector<1x128xf32> to vector<8x128xf32>
    %12 = arith.addf %9, %11 : vector<8x128xf32>
    %13 = vector.extract_strided_slice %12 {offsets = [0, 0], sizes = [8, 32], strides = [1, 1]} : vector<8x128xf32> to vector<8x32xf32>
    %14 = arith.negf %13 : vector<8x32xf32>
    %15 = math.exp %14 : vector<8x32xf32>
    %cst_13 = arith.constant 1.000000e+00 : f32
    %16 = vector.broadcast %cst_13 : f32 to vector<8x32xf32>
    %17 = arith.addf %16, %15 : vector<8x32xf32>
    %18 = arith.divf %16, %17 : vector<8x32xf32>
    %19 = vector.extract_strided_slice %12 {offsets = [0, 32], sizes = [8, 32], strides = [1, 1]} : vector<8x128xf32> to vector<8x32xf32>
    %20 = arith.negf %19 : vector<8x32xf32>
    %21 = math.exp %20 : vector<8x32xf32>
    %cst_14 = arith.constant 1.000000e+00 : f32
    %22 = vector.broadcast %cst_14 : f32 to vector<8x32xf32>
    %23 = arith.addf %22, %21 : vector<8x32xf32>
    %24 = arith.divf %22, %23 : vector<8x32xf32>
    %25 = vector.extract_strided_slice %12 {offsets = [0, 64], sizes = [8, 32], strides = [1, 1]} : vector<8x128xf32> to vector<8x32xf32>
    %26 = math.tanh %25 : vector<8x32xf32>
    %27 = vector.extract_strided_slice %12 {offsets = [0, 96], sizes = [8, 32], strides = [1, 1]} : vector<8x128xf32> to vector<8x32xf32>
    %28 = arith.negf %27 : vector<8x32xf32>
    %29 = math.exp %28 : vector<8x32xf32>
    %cst_15 = arith.constant 1.000000e+00 : f32
    %30 = vector.broadcast %cst_15 : f32 to vector<8x32xf32>
    %31 = arith.addf %30, %29 : vector<8x32xf32>
    %32 = arith.divf %30, %31 : vector<8x32xf32>
    %33 = arith.mulf %24, %4 : vector<8x32xf32>
    %34 = arith.mulf %18, %26 : vector<8x32xf32>
    %35 = arith.addf %33, %34 : vector<8x32xf32>
    %36 = math.tanh %35 : vector<8x32xf32>
    %37 = arith.mulf %32, %36 : vector<8x32xf32>
    %c0_16 = arith.constant 0 : index
    %c0_17 = arith.constant 0 : index
    %38 = vector.load %arg7[%c0_16, %c0_17] : memref<8x128xf32, #tpu.memory_space<vmem>>, vector<8x32xf32>
    tpu.vector_store %arg7[%c0_16, %c0_17], %37 {strides = array<i32>} : memref<8x128xf32, #tpu.memory_space<vmem>>, vector<8x32xf32>,
    %c0_18 = arith.constant 0 : index
    %c64 = arith.constant 64 : index
    %39 = vector.load %arg7[%c0_18, %c64] : memref<8x128xf32, #tpu.memory_space<vmem>>, vector<8x32xf32>
    tpu.vector_store %arg7[%c0_18, %c64], %35 {strides = array<i32>} : memref<8x128xf32, #tpu.memory_space<vmem>>, vector<8x32xf32>,
    %c1 = arith.constant 1 : index
    %c0_19 = arith.constant 0 : index
    %c0_20 = arith.constant 0 : index
    %40 = vector.load %arg1[%c1, %c0_19, %c0_20] : memref<2x8x32xf32, #tpu.memory_space<vmem>>, vector<1x8x32xf32>
    %41 = vector.shape_cast %40 : vector<1x8x32xf32> to vector<8x32xf32>
    %c1_21 = arith.constant 1 : index
    %c0_22 = arith.constant 0 : index
    %c0_23 = arith.constant 0 : index
    %42 = vector.load %arg2[%c1_21, %c0_22, %c0_23] : memref<2x8x32xf32, #tpu.memory_space<vmem>>, vector<1x8x32xf32>
    %43 = vector.shape_cast %42 : vector<1x8x32xf32> to vector<8x32xf32>
    %c0_24 = arith.constant 0 : index
    %c0_25 = arith.constant 0 : index
    %44 = vector.load %arg4[%c0_24, %c0_25] : memref<64x128xf32, #tpu.memory_space<vmem>>, vector<32x128xf32>
    %cst_26 = arith.constant dense<0.000000e+00> : vector<8x128xf32>
    %45 = tpu.matmul %37, %44, %cst_26 {dimension_numbers = #tpu.dot_dimension_numbers<[1], [0], [0], [1], [0, 0, 1, 1], [], []>} : vector<8x32xf32>, vector<32x128xf32>, vector<8x128xf32> -> vector<8x128xf32>
    %c32 = arith.constant 32 : index
    %c0_27 = arith.constant 0 : index
    %46 = vector.load %arg4[%c32, %c0_27] : memref<64x128xf32, #tpu.memory_space<vmem>>, vector<32x128xf32>
    %cst_28 = arith.constant dense<0.000000e+00> : vector<8x128xf32>
    %47 = tpu.matmul %41, %46, %cst_28 {dimension_numbers = #tpu.dot_dimension_numbers<[1], [0], [0], [1], [0, 0, 1, 1], [], []>} : vector<8x32xf32>, vector<32x128xf32>, vector<8x128xf32> -> vector<8x128xf32>
    %48 = arith.addf %45, %47 : vector<8x128xf32>
    %c0_29 = arith.constant 0 : index
    %c0_30 = arith.constant 0 : index
    %49 = vector.load %arg6[%c0_29, %c0_30] : memref<1x128xf32, #tpu.memory_space<vmem>>, vector<1x128xf32>
    %50 = vector.broadcast %49 : vector<1x128xf32> to vector<8x128xf32>
    %51 = arith.addf %48, %50 : vector<8x128xf32>
    %52 = vector.extract_strided_slice %51 {offsets = [0, 0], sizes = [8, 32], strides = [1, 1]} : vector<8x128xf32> to vector<8x32xf32>
    %53 = arith.negf %52 : vector<8x32xf32>
    %54 = math.exp %53 : vector<8x32xf32>
    %cst_31 = arith.constant 1.000000e+00 : f32
    %55 = vector.broadcast %cst_31 : f32 to vector<8x32xf32>
    %56 = arith.addf %55, %54 : vector<8x32xf32>
    %57 = arith.divf %55, %56 : vector<8x32xf32>
    %58 = vector.extract_strided_slice %51 {offsets = [0, 32], sizes = [8, 32], strides = [1, 1]} : vector<8x128xf32> to vector<8x32xf32>
    %59 = arith.negf %58 : vector<8x32xf32>
    %60 = math.exp %59 : vector<8x32xf32>
    %cst_32 = arith.constant 1.000000e+00 : f32
    %61 = vector.broadcast %cst_32 : f32 to vector<8x32xf32>
    %62 = arith.addf %61, %60 : vector<8x32xf32>
    %63 = arith.divf %61, %62 : vector<8x32xf32>
    %64 = vector.extract_strided_slice %51 {offsets = [0, 64], sizes = [8, 32], strides = [1, 1]} : vector<8x128xf32> to vector<8x32xf32>
    %65 = math.tanh %64 : vector<8x32xf32>
    %66 = vector.extract_strided_slice %51 {offsets = [0, 96], sizes = [8, 32], strides = [1, 1]} : vector<8x128xf32> to vector<8x32xf32>
    %67 = arith.negf %66 : vector<8x32xf32>
    %68 = math.exp %67 : vector<8x32xf32>
    %cst_33 = arith.constant 1.000000e+00 : f32
    %69 = vector.broadcast %cst_33 : f32 to vector<8x32xf32>
    %70 = arith.addf %69, %68 : vector<8x32xf32>
    %71 = arith.divf %69, %70 : vector<8x32xf32>
    %72 = arith.mulf %63, %43 : vector<8x32xf32>
    %73 = arith.mulf %57, %65 : vector<8x32xf32>
    %74 = arith.addf %72, %73 : vector<8x32xf32>
    %75 = math.tanh %74 : vector<8x32xf32>
    %76 = arith.mulf %71, %75 : vector<8x32xf32>
    %c0_34 = arith.constant 0 : index
    %c32_35 = arith.constant 32 : index
    %77 = vector.load %arg7[%c0_34, %c32_35] : memref<8x128xf32, #tpu.memory_space<vmem>>, vector<8x32xf32>
    tpu.vector_store %arg7[%c0_34, %c32_35], %76 {strides = array<i32>} : memref<8x128xf32, #tpu.memory_space<vmem>>, vector<8x32xf32>,
    %c0_36 = arith.constant 0 : index
    %c96 = arith.constant 96 : index
    %78 = vector.load %arg7[%c0_36, %c96] : memref<8x128xf32, #tpu.memory_space<vmem>>, vector<8x32xf32>
    tpu.vector_store %arg7[%c0_36, %c96], %74 {strides = array<i32>} : memref<8x128xf32, #tpu.memory_space<vmem>>, vector<8x32xf32>,
    return
  }
}

</mosaic_0001>

<bundles_post_ra>
// kernel: tpu_custom_call.1
= control target key start
LH: loop header
LB: loop body
LE: loop exit
PB: predicated region body
PF: predicated region fallthrough
CT: control target
= control target key end

     0   :  { %12 = vsyncpa [#allocation3], 0  ;;  %s627_s0 = inlined_call_operand.hbm [shape: f32[8,16], index: 0, kind: input, shape index: {}]   ;;  %s628_s1 = inlined_call_operand.hbm [shape: f32[2,8,32], index: 1, kind: input, shape index: {}]   ;;  %s629_s2 = inlined_call_operand.hbm [shape: f32[2,8,32], index: 2, kind: input, shape index: {}]   ;;  %s630_s3 = inlined_call_operand.hbm [shape: f32[48,128], index: 3, kind: input, shape index: {}]   ;;  %s631_s4 = inlined_call_operand.hbm [shape: f32[64,128], index: 4, kind: input, shape index: {}]   ;;  %s632_s5 = inlined_call_operand.vmem [shape: f32[1,128], index: 5, kind: input, shape index: {}]   ;;  %s633_s6 = inlined_call_operand.vmem [shape: f32[1,128], index: 6, kind: input, shape index: {}]   ;;  %s634_s7 = inlined_call_operand.hbm [shape: f32[8,128], index: 7, kind: output, shape index: {}]  }
   0x1   :  { %13 = vsyncpa [#allocation6], 0 }
   0x2   :  { %14 = vsyncpa [#allocation9], 0  ;;  %s31_s26 = sshll.u32 %s628_s1, 4  ;;  %s32_s26 = int_to_ptr.hbm [resolvable:$true] %s31_s26 }
   0x3   :  { %15 = vsyncpa [#allocation4], 0  ;;  %s537_s27 = smov [#allocation5]   ;;  %s57_s8 = sshll.u32 %s630_s3, 4  ;;  %s58_s8 = int_to_ptr.hbm [resolvable:$true] %s57_s8 }
   0x4   :  { %s33_s28 = sshll.u32 %s537_s27, 4  ;;  %s538_s9 = smov 128   ;;  %s34_s28 = int_to_ptr.vmem [resolvable:$true] %s33_s28 }
   0x5   :  { %s539_s10 = smov 8   ;;  %s540_s11 = smov [#allocation8]  }
   0x6   :  { %39 = dma.hbm_to_vmem [thread:$0]  %s32_s26, 256, %s34_s28, [#allocation6], %s538_s9, %s538_s9, %s539_s10  }
   0x7   :  { %s59_s12 = sshll.u32 %s540_s11, 4  ;;  %s21_s15 = sshll.u32 %s627_s0, 4  ;;  %s60_s12 = int_to_ptr.vmem [resolvable:$true] %s59_s12  ;;  %s22_s15 = int_to_ptr.hbm [resolvable:$true] %s21_s15 }
   0x8   :  { %65 = dma.hbm_to_vmem [thread:$0]  %s58_s8, 768, %s60_s12, [#allocation9], %s538_s9, %s538_s9, %s539_s10  }
   0x9   :  { %s44_s17 = sshll.u32 %s629_s2, 4  ;;  %s541_s18 = smov [#allocation2]   ;;  %s45_s17 = int_to_ptr.hbm [resolvable:$true] %s44_s17 }
   0xa   :  { %s23_s19 = sshll.u32 %s541_s18, 4  ;;  %s542_s3 = smov [#allocation7]   ;;  %s24_s19 = int_to_ptr.vmem [resolvable:$true] %s23_s19 }
   0xb   :  { %26 = dma.hbm_to_vmem [thread:$0]  %s22_s15, 128, %s24_s19, [#allocation3]  }
   0xc   :  { %s46_s20 = sshll.u32 %s542_s3, 4  ;;  %s70_s23 = sshll.u32 %s631_s4, 4  ;;  %s47_s20 = int_to_ptr.vmem [resolvable:$true] %s46_s20  ;;  %s71_s23 = int_to_ptr.hbm [resolvable:$true] %s70_s23 }
   0xd   :  { %52 = dma.hbm_to_vmem [thread:$0]  %s45_s17, 256, %s47_s20, [#allocation6], %s538_s9, %s538_s9, %s539_s10  }
   0xe   :  { %s543_s0 = smov [#allocation10]  }
   0xf   :  { %s72_s24 = sshll.u32 %s543_s0, 4  ;;  %s73_s24 = int_to_ptr.vmem [resolvable:$true] %s72_s24 }
  0x10   :  { %78 = dma.hbm_to_vmem [thread:$0]  %s71_s23, 1024, %s73_s24, [#allocation9], %s538_s9, %s538_s9, %s539_s10  }
  0x11   :  { %529 = dma.done.wait [#allocation3], 128  }
  0x12   :  { %530 = vsyncadd [#allocation3], 4294967168 }
  0x13   :  { %531 = dma.done.wait [#allocation6], 512  }
  0x14   :  { %532 = vsyncadd [#allocation6], 4294966784 }
  0x15   :  { %533 = dma.done.wait [#allocation9], 1792  }
  0x16   :  { %534 = vsyncadd [#allocation9], 4294965504  ;;  %v111_v0 = vld [vmem:[#allocation8 + $0x28] sm:$0xff]  ;;  %v110_v1 = vld [vmem:[#allocation8 + $0x20] sm:$0xff]  ;;  %vm136_vm0 = vcmask 130048   ;;  %vm112_vm1 = vcmask 261120  }
  0x17   :  { %128 = vmatpush.msra.mxu0 %v111_v0  ;;  %v107_v2 = vld [vmem:[#allocation8 + $0x8] sm:$0xff]  ;;  %v106_v3 = vld [vmem:[#allocation8] sm:$0xff]  ;;  %v109_v4 = vld [vmem:[#allocation8 + $0x18] sm:$0xff]  ;;  %s544_s25 = smov 64   ;;  %s545_s26 = smov 32   ;;  %vm215_vm6 = vcmask 785920  }
  0x18   :  { %154 = vmatpush.msra.mxu1 %v107_v2  ;;  %v103_v5 = vld [vmem:[#allocation2] sm:$0xff]  ;;  %v108_v6 = vld [vmem:[#allocation8 + $0x10] sm:$0xff]  ;;  %v104_v7 = vld [vmem:[#allocation5] sm:$0xff]  ;;  %s339_s8 = sshll.u32 %s634_s7, 4  ;;  %vm324_vm11 = vcmask 523520   ;;  %vm330_vm12 = vcmask 1048320   ;;  %s340_s8 = int_to_ptr.hbm [resolvable:$true] %s339_s8 }
  0x19   :  { %129 = vmatpush.msra.mxu0 %v110_v1  ;;  %v367_v9 = vld [vmem:[%s632_s5] ss:$0 sm:$0xff]  ;;  %v105_v14 = vld [vmem:[#allocation7] sm:$0xff]  ;;  %v228_v36 = vld [vmem:[#allocation10 + $0x38] sm:$0xff] }
  0x1a   :  { %155 = vmatpush.msra.mxu1 %v106_v3  ;;  %v220_v18 = vld [vmem:[#allocation7 + $0x8] sm:$0xff]  ;;  %v224_v37 = vld [vmem:[#allocation10 + $0x18] sm:$0xff]  ;;  %v227_v38 = vld [vmem:[#allocation10 + $0x30] sm:$0xff]  ;;  %244 = vmatpush.msra.mxu2 %v228_v36 }
  0x1b   :  { %130 = vmatpush.msra.mxu0 %v109_v4  ;;  %352 = vmatmul.msk.f32.vlgmr.msra.gmra.mxu1 %vm136_vm0, %v103_v5  ;;  %v223_v39 = vld [vmem:[#allocation10 + $0x10] sm:$0xff]  ;;  %v226_v40 = vld [vmem:[#allocation10 + $0x28] sm:$0xff]  ;;  %v225_v42 = vld [vmem:[#allocation10 + $0x20] sm:$0xff] }
  0x1c   :  { %266 = vmatpush.msra.mxu3 %v224_v37  ;;  %v222_v41 = vld [vmem:[#allocation10 + $0x8] sm:$0xff]  ;;  %245 = vmatpush.msra.mxu2 %v227_v38  ;;  %v221_v43 = vld [vmem:[#allocation10] sm:$0xff]  ;;  %v218_v46 = vld [vmem:[#allocation5 + $0x8] sm:$0xff] }
  0x1d   :  { %131 = vmatpush.msra.mxu0 %v108_v6  ;;  %v368_v51 = vld [vmem:[%s633_s6] ss:$0 sm:$0xff]  ;;  %s546_s6 = smov [#allocation11]  }
  0x1e   :  { %351 = vmatmul.msk.f32.vlgmr.msra.gmra.mxu0 %vm112_vm1, %v104_v7  ;;  %267 = vmatpush.msra.mxu3 %v223_v39  ;;  %s337_s28 = sshll.u32 %s546_s6, 4  ;;  %s338_s28 = int_to_ptr.vmem [resolvable:$true] %s337_s28 }
  0x1f   :  { %246 = vmatpush.msra.mxu2 %v226_v40 }
  0x20   :  { %268 = vmatpush.msra.mxu3 %v222_v41 }
  0x21   :  { %247 = vmatpush.msra.mxu2 %v225_v42 }
  0x22   :  { %269 = vmatpush.msra.mxu3 %v221_v43  ;;  %354 = vmatmul.msk.f32.vlgmr.msra.gmra.mxu2 %vm112_vm1, %v218_v46 }
  0x98   :  { %v157_v8 = vpop.f32.mrf.mxu1 }
  0x9b   :  { %v133_v10 = vpop.f32.mrf.mxu0 }
  0x9c   :  { %v158_v11 = vadd.f32 %v157_v8, %v133_v10 }
  0x9e   :  { %v164_v12 = vadd.f32 %v367_v9, %v158_v11 }
  0xa0   :  { %369 = vtanh.f32 %v164_v12  ;;  %v353_v15 = vmul.f32 -1.442695, %v164_v12 }
  0xa2   :  { %371 = vpow2.f32 %v353_v15 }
  0xa5   :  { %v249_v50 = vpop.f32.mrf.mxu2 }
  0xa6   :  { %v370_v13 = vpop.eup %369 }
  0xa7   :  { %191 = vrot.lane.b32.xlu0 %v370_v13, %s544_s25 }
  0xa8   :  { %v372_v16 = vpop.eup %371 }
  0xa9   :  { %v168_v17 = vadd.f32 1.0, %v372_v16 }
  0xab   :  { %373 = vrcp.f32 %v168_v17  ;;  %v180_v24 = vand.u32 2147483648, %v168_v17  ;;  %vm174_vm3 = vweird.f32 %v168_v17  ;;  %v178_v25 = vand.u32 2147483647, %v168_v17 }
  0xad   :  { %v181_v27 = vor.u32 1.1754944e-38, %v180_v24  ;;  %vm179_vm5 = vcmp.eq.f32.partialorder %v178_v25, 8.507059e+37 }
  0xaf   :  { %186 = vrot.lane.b32.xlu0 %v105_v14, %s545_s26 }
  0xb1   :  { %v374_v19 = vpop.eup %373 }
  0xb2   :  { %v170_v20 = vmul.f32 %v374_v19, %v168_v17  ;;  %vm175_vm2 = vweird.f32 %v374_v19 }
  0xb3   :  { %vm176_vm4 = vmor %vm174_vm3, %vm175_vm2 }
  0xb4   :  { %v171_v21 = vsub.f32 1.0, %v170_v20 }
  0xb6   :  { %v172_v22 = vmul.f32 %v374_v19, %v171_v21 }
  0xb7   :  { %300 = vrot.lane.b32.xlu0 %v220_v18, %s545_s26 }
  0xb8   :  { %v173_v23 = vadd.f32 %v374_v19, %v172_v22 }
  0xba   :  { %v177_v26 = vsel %vm176_vm4, %v374_v19, %v173_v23 }
  0xbb   :  { %v182_v29 = vsel %vm179_vm5, %v181_v27, %v177_v26 }
 0x119   :  { %v192_v28 = vpop.permute.xlu0 %191 }
 0x11a   :  { %v194_v30 = vmul.f32 %v192_v28, %v182_v29 }
 0x11c   :  { %196 = vrot.lane.b32.xlu1 %v194_v30, %s545_s26 }
 0x121   :  { %v187_v31 = vpop.permute.xlu0 %186 }
 0x122   :  { %v189_v32 = vmul.f32 %v187_v31, %v182_v29 }
 0x129   :  { %v301_v47 = vpop.permute.xlu0 %300 }
 0x18e   :  { %v197_v33 = vpop.permute.xlu1 %196 }
 0x18f   :  { %v199_v34 = vadd.f32 %v197_v33, %v189_v32 }
 0x191   :  { %375 = vtanh.f32 %v199_v34  ;;  %212 = vrot.lane.b32.xlu0 %v199_v34, %s545_s26 }
 0x197   :  { %v376_v35 = vpop.eup %375 }
 0x198   :  { %202 = vrot.lane.b32.xlu1 %v376_v35, %s544_s25 }
 0x203   :  { %v213_v49 = vpop.permute.xlu0 %212 }
 0x20a   :  { %v203_v44 = vpop.permute.xlu1 %202 }
 0x20b   :  { %v205_v45 = vmul.f32 %v203_v44, %v182_v29 }
 0x20d   :  { %207 = vrot.lane.b32.xlu2 %v205_v45, %s545_s26 }
 0x267   :  { %v208_v48 = vpop.permute.xlu2 %207 }
 0x268   :  { %210 = vst.msk [vmem:[#allocation11] sm:$0xff] %vm112_vm1, %v208_v48  ;;  %355 = vmatmul.msk.f32.vlgmr.msra.gmra.mxu3 %vm112_vm1, %v208_v48 }
 0x269   :  { %216 = vst.msk [vmem:[#allocation11] sm:$0xff] %vm215_vm6, %v213_v49 }
 0x2eb   :  { %v271_v52 = vpop.f32.mrf.mxu3 }
 0x2ec   :  { %v272_v53 = vadd.f32 %v271_v52, %v249_v50 }
 0x2ee   :  { %v278_v54 = vadd.f32 %v368_v51, %v272_v53 }
 0x2f0   :  { %377 = vtanh.f32 %v278_v54  ;;  %v356_v56 = vmul.f32 -1.442695, %v278_v54 }
 0x2f2   :  { %379 = vpow2.f32 %v356_v56 }
 0x2f6   :  { %v378_v55 = vpop.eup %377 }
 0x2f7   :  { %305 = vrot.lane.b32.xlu2 %v378_v55, %s544_s25 }
 0x2f8   :  { %v380_v57 = vpop.eup %379 }
 0x2f9   :  { %v282_v58 = vadd.f32 1.0, %v380_v57 }
 0x2fb   :  { %381 = vrcp.f32 %v282_v58  ;;  %v294_v0 = vand.u32 2147483648, %v282_v58  ;;  %vm288_vm8 = vweird.f32 %v282_v58  ;;  %v292_v1 = vand.u32 2147483647, %v282_v58 }
 0x2fd   :  { %v295_v3 = vor.u32 1.1754944e-38, %v294_v0  ;;  %vm293_vm10 = vcmp.eq.f32.partialorder %v292_v1, 8.507059e+37 }
 0x301   :  { %v382_v59 = vpop.eup %381 }
 0x302   :  { %v284_v60 = vmul.f32 %v382_v59, %v282_v58  ;;  %vm289_vm7 = vweird.f32 %v382_v59 }
 0x303   :  { %vm290_vm9 = vmor %vm288_vm8, %vm289_vm7 }
 0x304   :  { %v285_v61 = vsub.f32 1.0, %v284_v60 }
 0x306   :  { %v286_v62 = vmul.f32 %v382_v59, %v285_v61 }
 0x308   :  { %v287_v63 = vadd.f32 %v382_v59, %v286_v62 }
 0x30a   :  { %v291_v2 = vsel %vm290_vm9, %v382_v59, %v287_v63 }
 0x30b   :  { %v296_v5 = vsel %vm293_vm10, %v295_v3, %v291_v2 }
 0x30c   :  { %v303_v7 = vmul.f32 %v301_v47, %v296_v5 }
 0x351   :  { %v306_v4 = vpop.permute.xlu2 %305 }
 0x352   :  { %v308_v6 = vmul.f32 %v306_v4, %v296_v5 }
 0x354   :  { %310 = vrot.lane.b32.xlu1 %v308_v6, %s545_s26 }
 0x3c6   :  { %v311_v8 = vpop.permute.xlu1 %310 }
 0x3c7   :  { %v313_v9 = vadd.f32 %v311_v8, %v303_v7 }
 0x3c9   :  { %383 = vtanh.f32 %v313_v9 }
 0x3cf   :  { %v384_v10 = vpop.eup %383 }
 0x3d0   :  { %316 = vrot.lane.b32.xlu2 %v384_v10, %s544_s25 }
 0x3d8   :  { %327 = vrot.lane.b32.xlu2 %v313_v9, %s544_s25 }
 0x42a   :  { %v317_v11 = vpop.permute.xlu2 %316 }
 0x42b   :  { %v319_v12 = vmul.f32 %v317_v11, %v296_v5 }
 0x42d   :  { %321 = vrot.lane.b32.xlu1 %v319_v12, %s544_s25 }
 0x432   :  { %v328_v14 = vpop.permute.xlu2 %327 }
 0x49f   :  { %v322_v13 = vpop.permute.xlu1 %321 }
 0x4a0   :  { %325 = vst.msk [vmem:[#allocation11] sm:$0xff] %vm324_vm11, %v322_v13 }
 0x4a1   :  { %331 = vst.msk [vmem:[#allocation11] sm:$0xff] %vm330_vm12, %v328_v14 }
 0x4a2   :  { %342 = dma.vmem_to_hbm [thread:$0]  %s338_s28, 128, %s340_s8, [#allocation4]  }
 0x4a3   :  { %535 = dma.done.wait [#allocation4], 128  }
 0x4a4   :  { %536 = vsyncadd [#allocation4], 4294967168 }
 0x4a5   :  { %347 = vsyncpa [#allocation3], 1 }
 0x4a6   :  { %348 = vsyncpa [#allocation6], 1 }
 0x4a7   :  { %349 = vsyncpa [#allocation9], 1 }
 0x4a8   :  { %350 = vsyncpa [#allocation4], 1 }

</bundles_post_ra>
